<compile_context>
chip_gen: v6e
topology: v6e:2x2x1
jax: 0.10.0
libtpu: 0.0.40
codegen_flags: <defaults>
</compile_context>

<pallas_src>
import functools

import jax
import jax.numpy as jnp
from jax import lax
from jax.experimental import pallas as pl
from jax.experimental.pallas import tpu as pltpu


def _round_up(x, m):
    return (x + m - 1) // m * m


def time_embedding_kernel(tt_ref, w_ref, b_ref, mask_ref, out_ref, *, D, P):
    # tt_ref:   (TILE_M, P)    f32 -- P original rows packed per 128-lane row
    # w_ref:    (P, P*D)       f32 -- block-diagonal W_expand (or (1, D) if P==1)
    # b_ref:    (1, P*D)       f32 -- fused [b_lin, b_per...] tiled P times
    # mask_ref: (1, P*D)       f32 -- 1.0 on the "plain linear" column of each
    #                                 D-wide segment, 0.0 elsewhere (resident)
    # out_ref:  (TILE_M, P*D)  f32 -- lane-dense packed output
    tt = tt_ref[...]
    b = b_ref[...]

    if P > 1:
        # Expansion + multiply on the MXU (idle otherwise); VPU only does +b,
        # sin and the final blend.  HIGHEST keeps f32 parity with the reference.
        y = jnp.dot(tt, w_ref[...],
                    preferred_element_type=jnp.float32,
                    precision=lax.Precision.HIGHEST) + b
    else:
        # P == 1: tt is (TILE_M, 1), w_ref is (1, D) -> plain VPU broadcast.
        y = tt * w_ref[...] + b

    is_linear_col = mask_ref[...] != 0.0                   # (1, P*D), broadcasts
    out_ref[...] = jnp.where(is_linear_col, y, jnp.sin(y))


def time_embedding(tt, w_lin, b_lin, w_per, b_per, *, tile_rows=4096):
    """tt: (B, S, 1). Returns (B, S, embed_time) float32."""
    B, S, _ = tt.shape
    D = 1 + w_per.shape[0]                 # embed_time
    N = B * S

    # Lane-dense packing factor: P original rows per 128-lane output row.
    # TODO(synk): when 128 % D != 0 (P == 1) the output last dim is not a
    # multiple of 128 -> masked partial stores (correct, slower store path).
    P = 128 // D if (D <= 128 and 128 % D == 0) else 1
    PD = P * D

    # Fuse the two Linear(1, .) layers into one (D,) weight/bias.
    w_fused = jnp.concatenate(
        [jnp.reshape(w_lin, (1,)), jnp.reshape(w_per, (-1,))]).astype(jnp.float32)
    b_fused = jnp.concatenate(
        [jnp.reshape(b_lin, (1,)), jnp.reshape(b_per, (-1,))]).astype(jnp.float32)

    if P > 1:
        # Block-diagonal expansion matrix: W_expand[p, p*D:(p+1)*D] = w_fused.
        eye = jnp.eye(P, dtype=jnp.float32)                      # (P, P)
        w_expand = (eye[:, :, None] * w_fused[None, None, :]).reshape(P, PD)
    else:
        w_expand = w_fused.reshape(1, D)
    b = jnp.tile(b_fused.reshape(1, D), (1, P))                  # (1, P*D)

    # Precomputed linear-column mask (resident): 1.0 where (lane % D) == 0.
    lane = jnp.arange(PD, dtype=jnp.int32)
    mask = ((lane % D) == 0).astype(jnp.float32).reshape(1, PD)

    # Pack tt rows: (N,) -> (M_pad, P), zero-padding the tail.
    M = pl.cdiv(N, P)                                      # packed rows
    tile_rows = _round_up(max(int(tile_rows), 8), 8)       # (8,128) safety
    tile_m = min(tile_rows, _round_up(M, 8))
    # Keep >= 2 grid steps when M allows it (v7x megacore sharding).
    tile_m = min(tile_m, max(8, _round_up(pl.cdiv(M, 2), 8)))
    M_pad = _round_up(M, tile_m)
    tt_flat = tt.reshape(-1).astype(jnp.float32)
    tt_packed = jnp.pad(tt_flat, (0, M_pad * P - N)).reshape(M_pad, P)

    grid = (M_pad // tile_m,)
    kernel = functools.partial(time_embedding_kernel, D=D, P=P)

    out_packed = pl.pallas_call(
        kernel,
        out_shape=jax.ShapeDtypeStruct((M_pad, PD), jnp.float32),
        grid=grid,
        in_specs=[
            pl.BlockSpec((tile_m, P), lambda i: (i, 0)),          # tt tile
            pl.BlockSpec(w_expand.shape, lambda i: (0, 0)),       # W_expand, resident
            pl.BlockSpec((1, PD), lambda i: (0, 0)),              # b, resident
            pl.BlockSpec((1, PD), lambda i: (0, 0)),              # mask, resident
        ],
        out_specs=pl.BlockSpec((tile_m, PD), lambda i: (i, 0)),
        compiler_params=pltpu.CompilerParams(
            dimension_semantics=("parallel",)),
    )(tt_packed, w_expand, b, mask)

    # (M_pad, P*D) row-major == (M_pad*P, D) row-major (free bitcast).
    out_rows = out_packed.reshape(M_pad * P, D)
    if M_pad * P != N:
        # Only pay the pad-slice copy when there actually is tail padding.
        out_rows = out_rows[:N]
    return out_rows.reshape(B, S, D)


def reference(tt, w_lin, b_lin, w_per, b_per):
    # Pure-broadcast reference (mathematically identical to Linear(1, .)).
    out1 = tt * jnp.reshape(w_lin, (1, 1, 1)) + jnp.reshape(b_lin, (1, 1, 1))
    out2 = jnp.sin(tt * jnp.reshape(w_per, (1, 1, -1)) + jnp.reshape(b_per, (1, 1, -1)))
    return jnp.concatenate([out1, out2], axis=-1)


if __name__ == "__main__":
    key = jax.random.PRNGKey(0)
    k_tt, k_wp, k_bp, k_wl, k_bl = jax.random.split(key, 5)

    batch, seq, embed_time = 2, 8, 32

    tt = jax.random.uniform(k_tt, (batch, seq, 1), dtype=jnp.float32)

    # utils.init_network_weights ~ N(0, 0.1), biases 0.
    w_per = 0.1 * jax.random.normal(k_wp, (embed_time - 1, 1), dtype=jnp.float32)
    b_per = jnp.zeros((embed_time - 1,), dtype=jnp.float32)
    w_lin = 0.1 * jax.random.normal(k_wl, (1, 1), dtype=jnp.float32)
    b_lin = jnp.zeros((1,), dtype=jnp.float32)

    out = time_embedding(tt, w_lin, b_lin, w_per, b_per)
    out = jax.block_until_ready(out)
    ref = reference(tt, w_lin, b_lin, w_per, b_per)
    assert out.shape == (batch, seq, embed_time), out.shape
    assert jnp.allclose(out, ref, atol=1e-5, rtol=1e-5), float(jnp.max(jnp.abs(out - ref)))

    # Second check: exercises grid > 1, the MXU expansion path and the padded
    # tail (N not a tile multiple), plus the tile_rows round-to-8 fix.
    tt2 = jax.random.uniform(jax.random.PRNGKey(1), (3, 1000, 1), dtype=jnp.float32)
    out2 = time_embedding(tt2, w_lin, b_lin, w_per, b_per, tile_rows=100)
    out2 = jax.block_until_ready(out2)
    ref2 = reference(tt2, w_lin, b_lin, w_per, b_per)
    assert out2.shape == (3, 1000, embed_time), out2.shape
    assert jnp.allclose(out2, ref2, atol=1e-5, rtol=1e-5), float(jnp.max(jnp.abs(out2 - ref2)))

    # Third check: embed_time that doesn't divide 128 -> P == 1 broadcast path.
    w_per3 = 0.1 * jax.random.normal(k_bp, (23, 1), dtype=jnp.float32)
    b_per3 = jnp.zeros((23,), dtype=jnp.float32)
    out3 = time_embedding(tt2, w_lin, b_lin, w_per3, b_per3)
    out3 = jax.block_until_ready(out3)
    ref3 = reference(tt2, w_lin, b_lin, w_per3, b_per3)
    assert out3.shape == (3, 1000, 24), out3.shape
    assert jnp.allclose(out3, ref3, atol=1e-5, rtol=1e-5), float(jnp.max(jnp.abs(out3 - ref3)))

    print("KERNEL_OK")
</pallas_src>

<mosaic_0001>
module attributes {stable_mosaic.version = 11 : i64} {
  func.func @time_embedding_kernel(%arg0: i32, %arg1: memref<8x4xf32, #tpu.memory_space<vmem>>, %arg2: memref<4x128xf32, #tpu.memory_space<vmem>>, %arg3: memref<1x128xf32, #tpu.memory_space<vmem>>, %arg4: memref<1x128xf32, #tpu.memory_space<vmem>>, %arg5: memref<8x128xf32, #tpu.memory_space<vmem>>) attributes {dimension_semantics = [#tpu.dimension_semantics<parallel>], iteration_bounds = array<i64: 1>, scalar_prefetch = 0 : i64, scratch_operands = 0 : i64, tpu.core_type = #tpu.core_type<tc>, window_params = [{transform_indices = @transform_0, window_bounds = array<i64: 8, 4>}, {pipeline_mode = #tpu.pipeline_mode<synchronous>, transform_indices = @transform_1, window_bounds = array<i64: 4, 128>}, {pipeline_mode = #tpu.pipeline_mode<synchronous>, transform_indices = @transform_2, window_bounds = array<i64: 1, 128>}, {pipeline_mode = #tpu.pipeline_mode<synchronous>, transform_indices = @transform_3, window_bounds = array<i64: 1, 128>}, {transform_indices = @transform_4, window_bounds = array<i64: 8, 128>}]} {
    %c0 = arith.constant 0 : index
    %c0_0 = arith.constant 0 : index
    %0 = vector.load %arg1[%c0, %c0_0] : memref<8x4xf32, #tpu.memory_space<vmem>>, vector<8x4xf32>
    %c0_1 = arith.constant 0 : index
    %c0_2 = arith.constant 0 : index
    %1 = vector.load %arg3[%c0_1, %c0_2] : memref<1x128xf32, #tpu.memory_space<vmem>>, vector<1x128xf32>
    %c0_3 = arith.constant 0 : index
    %c0_4 = arith.constant 0 : index
    %2 = vector.load %arg2[%c0_3, %c0_4] : memref<4x128xf32, #tpu.memory_space<vmem>>, vector<4x128xf32>
    %cst = arith.constant dense<0.000000e+00> : vector<8x128xf32>
    %3 = tpu.matmul %0, %2, %cst {dimension_numbers = #tpu.dot_dimension_numbers<[1], [0], [0], [1], [0, 0, 1, 1], [], []>, precision = #tpu.contract_precision<fp32>} : vector<8x4xf32>, vector<4x128xf32>, vector<8x128xf32> -> vector<8x128xf32>
    %4 = vector.broadcast %1 : vector<1x128xf32> to vector<8x128xf32>
    %5 = arith.addf %3, %4 : vector<8x128xf32>
    %c0_5 = arith.constant 0 : index
    %c0_6 = arith.constant 0 : index
    %6 = vector.load %arg4[%c0_5, %c0_6] : memref<1x128xf32, #tpu.memory_space<vmem>>, vector<1x128xf32>
    %cst_7 = arith.constant 0.000000e+00 : f32
    %7 = vector.broadcast %cst_7 : f32 to vector<1x128xf32>
    %8 = arith.cmpf one, %6, %7 : vector<1x128xf32>
    %9 = math.sin %5 : vector<8x128xf32>
    %10 = vector.shape_cast %8 : vector<1x128xi1> to vector<1x128xi1>
    %11 = vector.broadcast %10 : vector<1x128xi1> to vector<8x128xi1>
    %12 = arith.select %11, %5, %9 : vector<8x128xi1>, vector<8x128xf32>
    %c0_8 = arith.constant 0 : index
    %c0_9 = arith.constant 0 : index
    %13 = vector.load %arg5[%c0_8, %c0_9] : memref<8x128xf32, #tpu.memory_space<vmem>>, vector<8x128xf32>
    tpu.vector_store %arg5[%c0_8, %c0_9], %12 {strides = array<i32>} : memref<8x128xf32, #tpu.memory_space<vmem>>, vector<8x128xf32>,
    return
  }
  func.func @transform_0(%arg0: i32) -> (i32, i32) {
    %c0_i32 = arith.constant 0 : i32
    %c0_i32_0 = arith.constant 0 : i32
    return %arg0, %c0_i32 : i32, i32
  }
  func.func @transform_1(%arg0: i32) -> (i32, i32) {
    %c0_i32 = arith.constant 0 : i32
    %c0_i32_0 = arith.constant 0 : i32
    %c0_i32_1 = arith.constant 0 : i32
    return %c0_i32, %c0_i32_0 : i32, i32
  }
  func.func @transform_2(%arg0: i32) -> (i32, i32) {
    %c0_i32 = arith.constant 0 : i32
    %c0_i32_0 = arith.constant 0 : i32
    %c0_i32_1 = arith.constant 0 : i32
    return %c0_i32, %c0_i32_0 : i32, i32
  }
  func.func @transform_3(%arg0: i32) -> (i32, i32) {
    %c0_i32 = arith.constant 0 : i32
    %c0_i32_0 = arith.constant 0 : i32
    %c0_i32_1 = arith.constant 0 : i32
    return %c0_i32, %c0_i32_0 : i32, i32
  }
  func.func @transform_4(%arg0: i32) -> (i32, i32) {
    %c0_i32 = arith.constant 0 : i32
    %c0_i32_0 = arith.constant 0 : i32
    return %arg0, %c0_i32 : i32, i32
  }
}

</mosaic_0001>

<bundles_post_ra>
// kernel: tpu_custom_call.1
= control target key start
LH: loop header
LB: loop body
LE: loop exit
PB: predicated region body
PF: predicated region fallthrough
CT: control target
= control target key end

     0   :  { %vm31_vm0 = vcmask 1043456   ;;  %v696_v2 = vmov 0.0   ;;  %vm697_vm1 = vmmov 0   ;;  %vm27_vm2 = vcmask 31744   ;;  %s774_s0 = inlined_call_operand.vmem [shape: f32[8,4], index: 0, kind: input, shape index: {}]   ;;  %s775_s1 = inlined_call_operand.vmem [shape: f32[4,128], index: 1, kind: input, shape index: {}]   ;;  %s776_s2 = inlined_call_operand.vmem [shape: f32[1,128], index: 2, kind: input, shape index: {}]   ;;  %s777_s3 = inlined_call_operand.vmem [shape: f32[1,128], index: 3, kind: input, shape index: {}]   ;;  %s778_s4 = inlined_call_operand.hbm [shape: f32[8,128], index: 4, kind: output, shape index: {}]  }
   0x1   :  { %v20_v0 = vld [vmem:[%s775_s1] sm:$0xf]  ;;  %626 = vmatprep.subr.mxu0 %v696_v2  ;;  %628 = vmatprep.mubr.msk.f32.mxu0 %vm697_vm1, %v696_v2 }
   0x2   :  { %v18_v1 = vld [vmem:[%s774_s0] sm:$0xff]  ;;  %v33_v3 = vsel %vm31_vm0, %v20_v0, 0 }
   0x3   :  { %9 = vsyncpa [#allocation3], 0  ;;  %v66_v4 = vand.u32 4294901760, %v33_v3  ;;  %631 = vmatprep.subr.mxu1 %v696_v2  ;;  %v29_v5 = vsel %vm27_vm2, %v18_v1, 0  ;;  %633 = vmatprep.mubr.msk.f32.mxu1 %vm697_vm1, %v696_v2  ;;  %v609_v15 = vld [vmem:[%s776_s2] ss:$0 sm:$0xff] }
   0x4   :  { %v101_v6 = vand.u32 4294901760, %v29_v5  ;;  %v698_v44 = vmov 683565275   ;;  %v699_v46 = vmov 2475754826   ;;  %s705_s20 = smov [#allocation2]  }
   0x5   :  { %627 = vmatpush3.msra.mxu0 %v66_v4  ;;  %v143_v7 = vsub.f32 %v33_v3, %v66_v4  ;;  %v700_v49 = vmov 2131351028   ;;  %v701_v52 = vmov 2102212464   ;;  %v702_v55 = vmov 920167782  }
   0x6   :  { %636 = vmatprep.subr.mxu0 %v696_v2  ;;  %v102_v8 = vsub.f32 %v29_v5, %v101_v6  ;;  %v703_v58 = vmov 1326507024   ;;  %s601_s21 = sshll.u32 %s705_s20, 4  ;;  %s602_s21 = int_to_ptr.vmem [resolvable:$true] %s601_s21 }
   0x7   :  { %v144_v9 = vand.u32 4294901760, %v143_v7  ;;  %p679_p1 = scmp.lt.s32.totalorder %s602_s21, %s602_s21 }
   0x8   :  { %v103_v10 = vand.u32 4294901760, %v102_v8 }
   0x9   :  { %v145_v11 = vsub.f32 %v143_v7, %v144_v9 }
   0xa   :  { %v104_v12 = vsub.f32 %v102_v8, %v103_v10 }
   0xb   :  { %v146_v13 = vand.u32 4294901760, %v145_v11 }
   0xc   :  { %v105_v14 = vand.u32 4294901760, %v104_v12 }
   0xd   :  { %632 = vmatpush3.msra.mxu1 %v146_v13 }
   0xe   :  { %629 = vmatmul.mubr.f32.vlgmr.msra.gmra.mxu0 %v105_v14  ;;  %634 = vmatmul.mubr.f32.vlgmr.msra.gmra.mxu1 %v101_v6 }
   0xf   :  { %637 = vmatpush3.msra.mxu0 %v143_v7  ;;  %641 = vmatprep.subr.mxu1 %v696_v2 }
  0x10   :  { %642 = vmatpush3.msra.mxu1 %v66_v4  ;;  %638 = vmatprep.mubr.msk.f32.mxu0 %vm697_vm1, %v696_v2 }
  0x11   :  { %646 = vmatprep.subr.mxu0 %v696_v2  ;;  %643 = vmatprep.mubr.msk.f32.mxu1 %vm697_vm1, %v696_v2 }
  0x12   :  { %639 = vmatmul.mubr.f32.vlgmr.msra.gmra.mxu0 %v102_v8  ;;  %644 = vmatmul.mubr.f32.vlgmr.msra.gmra.mxu1 %v103_v10 }
  0x13   :  { %647 = vmatpush3.msra.mxu0 %v144_v9  ;;  %651 = vmatprep.subr.mxu1 %v696_v2 }
  0x14   :  { %652 = vmatpush3.msra.mxu1 %v66_v4  ;;  %648 = vmatprep.mubr.msk.f32.mxu0 %vm697_vm1, %v696_v2 }
  0x15   :  { %653 = vmatprep.mubr.msk.f32.mxu1 %vm697_vm1, %v696_v2 }
  0x16   :  { %649 = vmatmul.mubr.f32.vlgmr.msra.gmra.mxu0 %v101_v6  ;;  %654 = vmatmul.mubr.f32.vlgmr.msra.gmra.mxu1 %v101_v6 }
  0xce   :  { %v107_v16 = vpop.f32.mrf.mxu0  ;;  %v183_v17 = vpop.f32.mrf.mxu1 }
  0xcf   :  { %v108_v18 = vadd.f32 %v609_v15, %v107_v16 }
  0xd0   :  { %v630_v19 = vpop.f32.mrf.mxu0  ;;  %v635_v20 = vpop.f32.mrf.mxu1 }
  0xd1   :  { %v184_v21 = vadd.f32 %v183_v17, %v108_v18 }
  0xd2   :  { %v257_v22 = vpop.f32.mrf.mxu0  ;;  %v331_v23 = vpop.f32.mrf.mxu1 }
  0xd3   :  { %v258_v24 = vadd.f32 %v257_v22, %v184_v21 }
  0xd4   :  { %v640_v25 = vpop.f32.mrf.mxu0  ;;  %v645_v26 = vpop.f32.mrf.mxu1 }
  0xd5   :  { %v332_v27 = vadd.f32 %v331_v23, %v258_v24 }
  0xd6   :  { %v405_v28 = vpop.f32.mrf.mxu0  ;;  %v477_v29 = vpop.f32.mrf.mxu1 }
  0xd7   :  { %v406_v30 = vadd.f32 %v405_v28, %v332_v27 }
  0xd8   :  { %v650_v31 = vpop.f32.mrf.mxu0  ;;  %v655_v32 = vpop.f32.mrf.mxu1 }
  0xd9   :  { %v746_v33 = vadd.f32 %v477_v29, %v406_v30 }
  0xdb   :  { %v486_v34 = vand.u32 2139095040, %v746_v33  ;;  %v483_v38 = vand.u32 2147483647, %v746_v33  ;;  %vm485_vm10 = vcmp.lt.s32.totalorder %v746_v33, 0  ;;  %vm575_vm1 = vweird.f32 %v746_v33 }
  0xdd   :  { %v487_v35 = vshrl.u32 %v486_v34, 23  ;;  %v490_v42 = vand.u32 8388607, %v483_v38  ;;  %vm484_vm11 = vcmp.le.f32.partialorder %v483_v38, 0.7853982 }
  0xdf   :  { %v610_v36 = vadd.s32 4294967169, %v487_v35  ;;  %v491_v60 = vor.u32 8388608, %v490_v42 }
  0xe1   :  { %v493_v37 = vadd.s32 1, %v610_v36  ;;  %v531_v10 = vshll.u32 %v491_v60, 8 }
  0xe3   :  { %vm494_vm3 = vcmp.gt.s32.totalorder %v493_v37, 0 }
  0xe4   :  { %v495_v39 = vsel %vm494_vm3, %v493_v37, 0 }
  0xe5   :  { %v497_v40 = vand.u32 31, %v495_v39  ;;  %v496_v43 = vshrl.u32 %v495_v39, 5 }
  0xe7   :  { %v498_v41 = vsub.s32 32, %v497_v40  ;;  %v500_v45 = vshll.u32 %v698_v44, %v497_v40  ;;  %v503_v47 = vshll.u32 %v699_v46, %v497_v40  ;;  %v506_v51 = vshll.u32 %v700_v49, %v497_v40 }
  0xe8   :  { %v509_v54 = vshll.u32 %v701_v52, %v497_v40  ;;  %v512_v57 = vshll.u32 %v702_v55, %v497_v40  ;;  %vm515_vm4 = vcmp.lt.s32.totalorder %v496_v43, 1  ;;  %vm518_vm5 = vcmp.lt.s32.totalorder %v496_v43, 4 }
  0xe9   :  { %v501_v48 = vshrl.u32 %v699_v46, %v498_v41  ;;  %v504_v50 = vshrl.u32 %v700_v49, %v498_v41  ;;  %v507_v53 = vshrl.u32 %v701_v52, %v498_v41  ;;  %v510_v56 = vshrl.u32 %v702_v55, %v498_v41 }
  0xea   :  { %v513_v59 = vshrl.u32 %v703_v58, %v498_v41  ;;  %v499_v5 = vshrl.u32 %v698_v44, %v498_v41  ;;  %vm517_vm6 = vcmp.lt.s32.totalorder %v496_v43, 3  ;;  %vm516_vm7 = vcmp.lt.s32.totalorder %v496_v43, 2 }
  0xeb   :  { %v502_v61 = vor.u32 %v501_v48, %v500_v45  ;;  %v505_v62 = vor.u32 %v504_v50, %v503_v47  ;;  %v508_v63 = vor.u32 %v507_v53, %v506_v51  ;;  %v511_v0 = vor.u32 %v510_v56, %v509_v54  ;;  %v481_v53 = vld [vmem:[%s777_s3] sm:$0x1]  ;;  %s674_s3 = scalar_lea.vmem %s602_s21, 128 }
  0xec   :  { %v514_v1 = vor.u32 %v513_v59, %v512_v57  ;;  %v588_v52 = vlaneseq  ;;  %vm482_vm12 = vcmp.ne.f32.partialorder %v481_v53, 0.0  ;;  %v704_v58 = vmov 0   ;;  %p675_p0 = scmp.ne.s32.totalorder %s602_s21, %s674_s3  ;;  %p680_p2 = scmp.lt.s32.totalorder %s674_s3, %s674_s3 }
  0xed   :  { %v520_v2 = vsel %vm518_vm5, %v508_v63, 2102212464  ;;  %v523_v3 = vsel %vm515_vm4, %v502_v61, %v505_v62  ;;  %v527_v4 = vsel %vm515_vm4, %v505_v62, %v508_v63  ;;  %v524_v6 = vsel %vm518_vm5, %v511_v0, 920167782 }
  0xee   :  { %v528_v7 = vsel %vm518_vm5, %v514_v1, 1326507024  ;;  %v525_v8 = vsel %vm517_vm6, %v508_v63, %v524_v6  ;;  %v519_v11 = vsel %vm515_vm4, %v499_v5, %v502_v61  ;;  %v521_v12 = vsel %vm517_vm6, %v505_v62, %v520_v2  ;;  %p681_p3 = por %p680_p2, %p679_p1 }
  0xef   :  { %v529_v9 = vsel %vm517_vm6, %v511_v0, %v528_v7  ;;  %v526_v13 = vsel %vm516_vm7, %v523_v3, %v525_v8  ;;  %v522_v19 = vsel %vm516_vm7, %v519_v11, %v521_v12  ;;  %v589_v55 = vshrl.u32 %v588_v52, 7 }
  0xf0   :  { %v530_v14 = vsel %vm516_vm7, %v527_v4, %v529_v9  ;;  %v755_v17 = vmul.u32.u64.low %v531_v10, %v526_v13  ;;  %v756_v18 = vmul.u32.u64.high %v531_v10, %v526_v13, %v755_v17  ;;  %v538_v21 = vmul.u32 %v531_v10, %v522_v19  ;;  %p682_p4 = pnand %p681_p3, %p675_p0 }
  0xf1   :  { %v752_v15 = vmul.u32.u64.low %v531_v10, %v530_v14  ;;  %v753_v16 = vmul.u32.u64.high %v531_v10, %v530_v14, %v752_v15  ;;  %v590_v57 = vsub.s32 0, %v589_v55  ;;  %v587_v59 = vsel %vm482_vm12, 1, %v704_v58 }
  0xf2   :  { %v541_v20 = vadd.s32 1, %v756_v18 }
  0xf3   :  { %vm540_vm8 = vc.u32 %v753_v16, %v755_v17  ;;  %v539_v34 = vadd.s32 %v755_v17, %v753_v16  ;;  %v591_v61 = vrot.slane %v587_v59, %v590_v57 }
  0xf4   :  { %v542_v22 = vsel %vm540_vm8, %v541_v20, %v756_v18 }
  0xf5   :  { %v543_v23 = vadd.s32 %v542_v22, %v538_v21  ;;  %vm592_vm0 = vcmp.eq.s32.totalorder %v591_v61, 1 }
  0xf7   :  { %v544_v24 = vadd.s32 536870912, %v543_v23 }
  0xf9   :  { %v545_v25 = vshrl.u32 %v544_v24, 30 }
  0xfb   :  { %v546_v26 = vshll.u32 %v545_v25, 30  ;;  %v569_v48 = vsub.s32 4, %v545_v25 }
  0xfd   :  { %v547_v27 = vsub.s32 %v543_v23, %v546_v26  ;;  %v570_v51 = vsel %vm485_vm10, %v569_v48, %v545_v25 }
  0xfe   :  { %v572_v54 = vsel %vm484_vm11, 0, %v570_v51 }
  0xff   :  { %v549_v28 = vsub.s32 0, %v547_v27  ;;  %v576_v56 = vadd.s32 3, %v572_v54 }
 0x101   :  { %v611_v29 = vmin.u32 %v549_v28, %v547_v27  ;;  %v577_v60 = vand.u32 3, %v576_v56 }
 0x103   :  { %v551_v30 = vclz %v611_v29  ;;  %vm582_vm13 = vcmp.eq.s32.totalorder %v577_v60, 2  ;;  %vm579_vm14 = vcmp.eq.s32.totalorder %v577_v60, 0  ;;  %vm578_vm15 = vcmp.lt.s32.totalorder %v577_v60, 2 }
 0x105   :  { %v612_v31 = vadd.s32 4294967294, %v551_v30 }
 0x107   :  { %vm613_vm9 = vcmp.lt.s32.totalorder %v612_v31, 0 }
 0x108   :  { %v554_v32 = vsel %vm613_vm9, 0, %v612_v31 }
 0x109   :  { %v555_v35 = vsub.s32 32, %v554_v32  ;;  %v559_v36 = vsub.s32 4294967266, %v554_v32  ;;  %v556_v37 = vshll.u32 %v547_v27, %v554_v32 }
 0x10b   :  { %v557_v39 = vshrl.u32 %v539_v34, %v555_v35  ;;  %v560_v40 = vadd.s32 127, %v559_v36 }
 0x10d   :  { %v558_v41 = vor.u32 %v557_v39, %v556_v37  ;;  %v561_v42 = vshll.u32 %v560_v40, 23 }
 0x10f   :  { %v562_v43 = vor.u32 4788187, %v561_v42  ;;  %v565_v45 = vcvt.s32.f32 %v558_v41 }
 0x111   :  { %v563_v44 = vand.u32 2147483647, %v562_v43 }
 0x113   :  { %v566_v46 = vmul.f32 %v565_v45, %v563_v44 }
 0x115   :  { %v567_v47 = vxor.u32 2147483648, %v566_v46 }
 0x117   :  { %v568_v49 = vsel %vm485_vm10, %v567_v47, %v566_v46 }
 0x118   :  { %v571_v50 = vsel %vm484_vm11, %v746_v33, %v568_v49 }
 0x119   :  { %670 = vcosq.f32 %v571_v50 }
 0x11a   :  { %672 = vsinq.f32 %v571_v50 }
 0x126   :  { %v671_v38 = vpop.eup %670 }
 0x127   :  { %v673_v62 = vpop.eup %672  ;;  %v583_v63 = vxor.u32 2147483648, %v671_v38 }
 0x128   :  { %v580_v0 = vxor.u32 2147483648, %v673_v62 }
 0x129   :  { %v584_v1 = vsel %vm582_vm13, %v583_v63, %v673_v62 }
 0x12a   :  { %v581_v2 = vsel %vm579_vm14, %v671_v38, %v580_v0 }
 0x12b   :  { %v585_v3 = vsel %vm578_vm15, %v581_v2, %v584_v1 }
 0x12c   :  { %v586_v4 = vsel %vm575_vm1, nan, %v585_v3 }
 0x12d   :  { %v593_v5 = vsel %vm592_vm0, %v746_v33, %v586_v4 }
 0x12e   :  { %594 = vst [vmem:[#allocation2] sm:$0xff] %v593_v5 }
 0x12f   :  { %685 = shalt.err (!%p682_p4)
}
 0x130   :  { %604 = dma.vmem_to_hbm [thread:$0]  %s602_s21, 128, %s778_s4, [#allocation3]  }
 0x131   :  { %694 = dma.done.wait [#allocation3], 128  }
 0x132   :  { %695 = vsyncadd [#allocation3], 4294967168 }
 0x133   :  { %608 = vsyncpa [#allocation3], 1 }

</bundles_post_ra>
